<compile_context>
chip_gen: v7x
topology: tpu7x:2x2x1
jax: 0.10.0
libtpu: 0.0.40
codegen_flags: <defaults>
</compile_context>

<pallas_src>
import functools

import jax
import jax.numpy as jnp
import numpy as np
from jax.experimental import pallas as pl
from jax.experimental.pallas import tpu as pltpu


def _policy_loss_kernel(logp_ref, old_ref, adv_ref, *rest,
                        clip_eps, inv_seq_len, use_mask, lane_chunks):
    if use_mask:
        mask_ref, out_ref, num_acc, den_acc = rest
    else:
        out_ref, num_acc = rest
        mask_ref = None
        den_acc = None

    s = pl.program_id(1)

    @pl.when(s == 0)
    def _init():
        num_acc[...] = jnp.zeros_like(num_acc)
        if use_mask:
            den_acc[...] = jnp.zeros_like(den_acc)

    # Cast operands to f32 BEFORE the subtraction / exp (bf16-safe numerics).
    logp = logp_ref[...].astype(jnp.float32)
    old = old_ref[...].astype(jnp.float32)
    adv = adv_ref[...].astype(jnp.float32)

    ratio = jnp.exp(logp - old)                                   # EUP
    surr1 = ratio * adv
    surr2 = jnp.clip(ratio, 1.0 - clip_eps, 1.0 + clip_eps) * adv
    loss = -jnp.minimum(surr1, surr2)                             # (tb, ts) f32

    if use_mask:
        m = mask_ref[...].astype(jnp.float32)
        lm = loss * m
    else:
        m = None
        lm = loss

    if lane_chunks > 0:
        # Lane-dense accumulation: whole-vreg-column VPU adds; the cross-lane
        # (XLU) reduce is deferred to the finalize step below.
        for c in range(lane_chunks):
            sl = slice(c * 128, (c + 1) * 128)
            num_acc[...] += lm[:, sl]
            if use_mask:
                den_acc[...] += m[:, sl]
    else:
        # Fallback when the seq tile is not a multiple of 128 lanes.
        num_acc[...] += jnp.sum(lm, axis=-1, keepdims=True)
        if use_mask:
            den_acc[...] += jnp.sum(m, axis=-1, keepdims=True)

    @pl.when(s == pl.num_programs(1) - 1)
    def _finalize():
        num = jnp.sum(num_acc[...], axis=-1, keepdims=True)       # single XLU reduce
        if use_mask:
            den = jnp.sum(den_acc[...], axis=-1, keepdims=True)
            out_ref[...] = num / den
        else:
            out_ref[...] = num * inv_seq_len


def _pick_block(dim, cap, align):
    """Largest aligned divisor of `dim` that is <= cap, else the full dim."""
    if dim <= cap:
        return dim
    t = max(align, (cap // align) * align)
    while t >= align:
        if dim % t == 0:
            return t
        t -= align
    return dim  # fall back to full dimension (always legal)


def _sublane_align(dtype):
    """Minimum sublane multiple for packed tiling of this dtype."""
    return {4: 8, 2: 16, 1: 32}.get(jnp.dtype(dtype).itemsize, 8)


def _vmem_limit_bytes():
    """Generation-aware scoped-VMEM limit (v7x has half the VMEM of v5e/v6e)."""
    try:
        phys = pltpu.get_tpu_info().vmem_capacity_bytes
    except Exception:
        phys = 128 * 1024 * 1024
    if phys <= 64 * 1024 * 1024:          # v7x: 64 MiB physical per TensorCore
        return 44 * 1024 * 1024           # leave compiler headroom
    return 96 * 1024 * 1024               # v5e / v6e: 128 MiB physical


def policy_loss(log_probs, old_log_probs, advantages, action_mask=None,
                *, clip_eps=0.2, block_b=256, block_s=4096):
    """Pallas TPU implementation of PolicyLoss.forward; returns the scalar loss."""
    B, S = log_probs.shape
    use_mask = action_mask is not None

    if use_mask and action_mask.dtype == jnp.bool_:
        # Same byte width (no extra HBM traffic); avoids bool-ref lowering quirks.
        action_mask = action_mask.astype(jnp.int8)

    dtypes = [log_probs.dtype, old_log_probs.dtype, advantages.dtype]
    if use_mask:
        dtypes.append(action_mask.dtype)
    align_b = max(_sublane_align(d) for d in dtypes)

    # Batch tile: ensure the "parallel" axis has >=2 blocks whenever B allows,
    # so both of v7x's TensorCores participate (no-op on single-TC v5e/v6e).
    cap_b = block_b
    if B >= 2 * align_b:
        cap_b = min(cap_b, max(align_b, (B // 2 // align_b) * align_b))
    tb = _pick_block(B, cap_b, align_b)

    # Sequence tile: as large as the (generation-aware) VMEM budget allows,
    # accounting for double-buffering of every input stream.
    vmem_limit = _vmem_limit_bytes()
    bytes_per_row = sum(jnp.dtype(d).itemsize for d in dtypes)
    budget = vmem_limit // 2                       # headroom: scratch/out/temps
    max_ts = budget // (2 * tb * bytes_per_row)    # 2x: double buffering
    max_ts = max(128, (max_ts // 128) * 128)
    ts = _pick_block(S, min(block_s, max_ts), 128)

    n_b, n_s = B // tb, S // ts
    lane_chunks = ts // 128 if ts % 128 == 0 else 0
    acc_lanes = 128 if lane_chunks > 0 else 1

    kernel = functools.partial(
        _policy_loss_kernel,
        clip_eps=float(clip_eps),
        inv_seq_len=1.0 / float(S),
        use_mask=use_mask,
        lane_chunks=lane_chunks,
    )

    tile_spec = pl.BlockSpec((tb, ts), lambda b, s: (b, s))
    in_specs = [tile_spec, tile_spec, tile_spec]
    inputs = [log_probs, old_log_probs, advantages]
    scratch = [pltpu.VMEM((tb, acc_lanes), jnp.float32)]          # numerator
    if use_mask:
        in_specs.append(tile_spec)
        inputs.append(action_mask)
        scratch.append(pltpu.VMEM((tb, acc_lanes), jnp.float32))  # denominator

    in_bytes = sum(int(np.prod(x.shape)) * jnp.dtype(x.dtype).itemsize
                   for x in inputs)
    cost = pl.CostEstimate(flops=9 * B * S,
                           transcendentals=B * S,
                           bytes_accessed=in_bytes + B * 4)

    row_loss = pl.pallas_call(
        kernel,
        out_shape=jax.ShapeDtypeStruct((B, 1), jnp.float32),
        grid_spec=pltpu.PrefetchScalarGridSpec(
            num_scalar_prefetch=0,
            grid=(n_b, n_s),                               # reduction axis last
            in_specs=in_specs,
            out_specs=pl.BlockSpec((tb, 1), lambda b, s: (b, 0)),
            scratch_shapes=scratch,
        ),
        compiler_params=pltpu.CompilerParams(
            dimension_semantics=("parallel", "arbitrary"),
            vmem_limit_bytes=vmem_limit,
        ),
        cost_estimate=cost,
    )(*inputs)

    # Final .mean() over the batch: B floats, done in the wrapper so the batch
    # grid axis can stay "parallel" (v7x megacore).
    return jnp.mean(row_loss[:, 0])


def _reference(log_probs, old_log_probs, advantages, action_mask, clip_eps=0.2):
    """Literal pure-JAX transcription of the PyTorch forward (f32 math)."""
    log_probs = log_probs.astype(jnp.float32)
    old_log_probs = old_log_probs.astype(jnp.float32)
    advantages = advantages.astype(jnp.float32)
    ratio = jnp.exp(log_probs - old_log_probs)
    surr1 = ratio * advantages
    surr2 = jnp.clip(ratio, 1.0 - clip_eps, 1.0 + clip_eps) * advantages
    loss = -jnp.minimum(surr1, surr2)
    if action_mask is None:
        row = loss.mean(axis=-1)
    else:
        m = action_mask.astype(jnp.float32)
        row = (loss * m).sum(axis=-1) / m.sum(axis=-1)
    return row.mean()


if __name__ == "__main__":
    B, S = 16, 256                    # batch, sequence (small but multi-tile)
    key = jax.random.PRNGKey(0)
    k1, k2, k3, k4 = jax.random.split(key, 4)

    log_probs = jax.random.normal(k1, (B, S), jnp.float32) * 0.1 - 1.0
    old_log_probs = log_probs + jax.random.normal(k2, (B, S), jnp.float32) * 0.05
    advantages = jax.random.normal(k3, (B, S), jnp.float32)
    action_mask = (jax.random.uniform(k4, (B, S)) > 0.3).astype(jnp.float32)
    action_mask = action_mask.at[:, 0].set(1.0)   # ensure every row has >=1 valid token

    # Small seq block in the test to force a real multi-step reduction; the
    # batch-axis megacore split (tb=8 -> n_b=2) is exercised automatically.
    loss_masked = policy_loss(log_probs, old_log_probs, advantages, action_mask,
                              clip_eps=0.2, block_s=128)
    loss_nomask = policy_loss(log_probs, old_log_probs, advantages, None,
                              clip_eps=0.2, block_s=128)

    # Byte-reduction path: bf16 inputs + int8 mask (no wrapper-side upcast).
    lp_bf, olp_bf, adv_bf = (x.astype(jnp.bfloat16)
                             for x in (log_probs, old_log_probs, advantages))
    mask_i8 = action_mask.astype(jnp.int8)
    loss_bf16 = policy_loss(lp_bf, olp_bf, adv_bf, mask_i8,
                            clip_eps=0.2, block_s=128)

    jax.block_until_ready((loss_masked, loss_nomask, loss_bf16))

    ref_masked = _reference(log_probs, old_log_probs, advantages, action_mask, 0.2)
    ref_nomask = _reference(log_probs, old_log_probs, advantages, None, 0.2)
    ref_bf16 = _reference(lp_bf, olp_bf, adv_bf, mask_i8, 0.2)

    np.testing.assert_allclose(np.asarray(loss_masked), np.asarray(ref_masked),
                               rtol=1e-5, atol=1e-6)
    np.testing.assert_allclose(np.asarray(loss_nomask), np.asarray(ref_nomask),
                               rtol=1e-5, atol=1e-6)
    np.testing.assert_allclose(np.asarray(loss_bf16), np.asarray(ref_bf16),
                               rtol=2e-5, atol=1e-5)

    print("KERNEL_OK")
</pallas_src>

<mosaic_0001>
module attributes {stable_mosaic.version = 11 : i64} {
  func.func @_policy_loss_kernel(%arg0: i32, %arg1: i32, %arg2: memref<8x128xf32, #tpu.memory_space<vmem>>, %arg3: memref<8x128xf32, #tpu.memory_space<vmem>>, %arg4: memref<8x128xf32, #tpu.memory_space<vmem>>, %arg5: memref<8x128xf32, #tpu.memory_space<vmem>>, %arg6: memref<8x1xf32, #tpu.memory_space<vmem>>, %arg7: memref<8x128xf32, #tpu.memory_space<vmem>>, %arg8: memref<8x128xf32, #tpu.memory_space<vmem>>) attributes {dimension_semantics = [#tpu.dimension_semantics<parallel>, #tpu.dimension_semantics<arbitrary>], iteration_bounds = array<i64: 2, 2>, scalar_prefetch = 0 : i64, scratch_operands = 2 : i64, tpu.core_type = #tpu.core_type<tc>, window_params = [{transform_indices = @transform_0, window_bounds = array<i64: 8, 128>}, {transform_indices = @transform_1, window_bounds = array<i64: 8, 128>}, {transform_indices = @transform_2, window_bounds = array<i64: 8, 128>}, {transform_indices = @transform_3, window_bounds = array<i64: 8, 128>}, {transform_indices = @transform_4, window_bounds = array<i64: 8, 1>}]} {
    %c0_i32 = arith.constant 0 : i32
    %0 = arith.cmpi eq, %arg1, %c0_i32 : i32
    %1 = arith.extui %0 : i1 to i32
    %c0_i32_0 = arith.constant 0 : i32
    %2 = arith.cmpi ne, %1, %c0_i32_0 : i32
    scf.if %2 {
      %cst_19 = arith.constant 0.000000e+00 : f32
      %28 = vector.broadcast %cst_19 : f32 to vector<8x128xf32>
      %c0_20 = arith.constant 0 : index
      %c0_21 = arith.constant 0 : index
      %29 = vector.load %arg7[%c0_20, %c0_21] : memref<8x128xf32, #tpu.memory_space<vmem>>, vector<8x128xf32>
      tpu.vector_store %arg7[%c0_20, %c0_21], %28 {strides = array<i32>} : memref<8x128xf32, #tpu.memory_space<vmem>>, vector<8x128xf32>,
      %cst_22 = arith.constant 0.000000e+00 : f32
      %30 = vector.broadcast %cst_22 : f32 to vector<8x128xf32>
      %c0_23 = arith.constant 0 : index
      %c0_24 = arith.constant 0 : index
      %31 = vector.load %arg8[%c0_23, %c0_24] : memref<8x128xf32, #tpu.memory_space<vmem>>, vector<8x128xf32>
      tpu.vector_store %arg8[%c0_23, %c0_24], %30 {strides = array<i32>} : memref<8x128xf32, #tpu.memory_space<vmem>>, vector<8x128xf32>,
    } else {
    }
    %c0 = arith.constant 0 : index
    %c0_1 = arith.constant 0 : index
    %3 = vector.load %arg2[%c0, %c0_1] : memref<8x128xf32, #tpu.memory_space<vmem>>, vector<8x128xf32>
    %c0_2 = arith.constant 0 : index
    %c0_3 = arith.constant 0 : index
    %4 = vector.load %arg3[%c0_2, %c0_3] : memref<8x128xf32, #tpu.memory_space<vmem>>, vector<8x128xf32>
    %c0_4 = arith.constant 0 : index
    %c0_5 = arith.constant 0 : index
    %5 = vector.load %arg4[%c0_4, %c0_5] : memref<8x128xf32, #tpu.memory_space<vmem>>, vector<8x128xf32>
    %6 = arith.subf %3, %4 : vector<8x128xf32>
    %7 = math.exp %6 : vector<8x128xf32>
    %8 = arith.mulf %7, %5 : vector<8x128xf32>
    %cst = arith.constant 8.000000e-01 : f32
    %cst_6 = arith.constant 1.200000e+00 : f32
    %9 = vector.broadcast %cst : f32 to vector<8x128xf32>
    %10 = arith.maximumf %9, %7 : vector<8x128xf32>
    %11 = vector.broadcast %cst_6 : f32 to vector<8x128xf32>
    %12 = arith.minimumf %11, %10 : vector<8x128xf32>
    %13 = arith.mulf %12, %5 : vector<8x128xf32>
    %14 = arith.minimumf %8, %13 : vector<8x128xf32>
    %cst_7 = arith.constant 0.000000e+00 : f32
    %15 = vector.broadcast %cst_7 : f32 to vector<8x128xf32>
    %16 = arith.subf %15, %14 : vector<8x128xf32>
    %c0_8 = arith.constant 0 : index
    %c0_9 = arith.constant 0 : index
    %17 = vector.load %arg5[%c0_8, %c0_9] : memref<8x128xf32, #tpu.memory_space<vmem>>, vector<8x128xf32>
    %18 = arith.mulf %16, %17 : vector<8x128xf32>
    %c0_10 = arith.constant 0 : index
    %c0_11 = arith.constant 0 : index
    %19 = vector.load %arg7[%c0_10, %c0_11] : memref<8x128xf32, #tpu.memory_space<vmem>>, vector<8x128xf32>
    %20 = arith.addf %19, %18 : vector<8x128xf32>
    %c0_12 = arith.constant 0 : index
    %c0_13 = arith.constant 0 : index
    %21 = vector.load %arg7[%c0_12, %c0_13] : memref<8x128xf32, #tpu.memory_space<vmem>>, vector<8x128xf32>
    tpu.vector_store %arg7[%c0_12, %c0_13], %20 {strides = array<i32>} : memref<8x128xf32, #tpu.memory_space<vmem>>, vector<8x128xf32>,
    %c0_14 = arith.constant 0 : index
    %c0_15 = arith.constant 0 : index
    %22 = vector.load %arg8[%c0_14, %c0_15] : memref<8x128xf32, #tpu.memory_space<vmem>>, vector<8x128xf32>
    %23 = arith.addf %22, %17 : vector<8x128xf32>
    %c0_16 = arith.constant 0 : index
    %c0_17 = arith.constant 0 : index
    %24 = vector.load %arg8[%c0_16, %c0_17] : memref<8x128xf32, #tpu.memory_space<vmem>>, vector<8x128xf32>
    tpu.vector_store %arg8[%c0_16, %c0_17], %23 {strides = array<i32>} : memref<8x128xf32, #tpu.memory_space<vmem>>, vector<8x128xf32>,
    %c1_i32 = arith.constant 1 : i32
    %25 = arith.cmpi eq, %arg1, %c1_i32 : i32
    %26 = arith.extui %25 : i1 to i32
    %c0_i32_18 = arith.constant 0 : i32
    %27 = arith.cmpi ne, %26, %c0_i32_18 : i32
    scf.if %27 {
      %c0_19 = arith.constant 0 : index
      %c0_20 = arith.constant 0 : index
      %28 = vector.load %arg7[%c0_19, %c0_20] : memref<8x128xf32, #tpu.memory_space<vmem>>, vector<8x128xf32>
      %cst_21 = arith.constant dense<0.000000e+00> : vector<8xf32>
      %29 = vector.multi_reduction <add>, %28, %cst_21 [1] : vector<8x128xf32> to vector<8xf32>
      %30 = vector.shape_cast %29 : vector<8xf32> to vector<8x1xf32>
      %c0_22 = arith.constant 0 : index
      %c0_23 = arith.constant 0 : index
      %31 = vector.load %arg8[%c0_22, %c0_23] : memref<8x128xf32, #tpu.memory_space<vmem>>, vector<8x128xf32>
      %cst_24 = arith.constant dense<0.000000e+00> : vector<8xf32>
      %32 = vector.multi_reduction <add>, %31, %cst_24 [1] : vector<8x128xf32> to vector<8xf32>
      %33 = vector.shape_cast %32 : vector<8xf32> to vector<8x1xf32>
      %34 = arith.divf %30, %33 : vector<8x1xf32>
      %c0_25 = arith.constant 0 : index
      %c0_26 = arith.constant 0 : index
      %35 = vector.load %arg6[%c0_25, %c0_26] : memref<8x1xf32, #tpu.memory_space<vmem>>, vector<8x1xf32>
      tpu.vector_store %arg6[%c0_25, %c0_26], %34 {strides = array<i32>} : memref<8x1xf32, #tpu.memory_space<vmem>>, vector<8x1xf32>,
    } else {
    }
    return
  }
  func.func @transform_0(%arg0: i32, %arg1: i32) -> (i32, i32) {
    %c0_i32 = arith.constant 0 : i32
    return %arg0, %arg1 : i32, i32
  }
  func.func @transform_1(%arg0: i32, %arg1: i32) -> (i32, i32) {
    %c0_i32 = arith.constant 0 : i32
    return %arg0, %arg1 : i32, i32
  }
  func.func @transform_2(%arg0: i32, %arg1: i32) -> (i32, i32) {
    %c0_i32 = arith.constant 0 : i32
    return %arg0, %arg1 : i32, i32
  }
  func.func @transform_3(%arg0: i32, %arg1: i32) -> (i32, i32) {
    %c0_i32 = arith.constant 0 : i32
    return %arg0, %arg1 : i32, i32
  }
  func.func @transform_4(%arg0: i32, %arg1: i32) -> (i32, i32) {
    %c0_i32 = arith.constant 0 : i32
    %c0_i32_0 = arith.constant 0 : i32
    return %arg0, %c0_i32 : i32, i32
  }
}

</mosaic_0001>

<bundles_post_ra>
// kernel: tpu_custom_call.1
= control target key start
LH: loop header
LB: loop body
LE: loop exit
PB: predicated region body
PF: predicated region fallthrough
CT: control target
= control target key end

     0   :  { %s1337_s0 = inlined_call_operand.hbm [shape: f32[16,256], index: 0, kind: input, shape index: {}]   ;;  %s1338_s1 = inlined_call_operand.hbm [shape: f32[16,256], index: 1, kind: input, shape index: {}]   ;;  %s1339_s2 = inlined_call_operand.hbm [shape: f32[16,256], index: 2, kind: input, shape index: {}]   ;;  %s1340_s3 = inlined_call_operand.hbm [shape: f32[16,256], index: 3, kind: input, shape index: {}]   ;;  %s1341_s4 = inlined_call_operand.hbm [shape: f32[16,1], index: 4, kind: output, shape index: {}]  }
   0x1   :  { %1356 = sst [smem:[#allocation28_spill]] %s1338_s1 }
   0x2   :  { %9 = vsyncpa [#allocation5], 0 }
   0x3   :  { %11 = vsyncpa [#allocation5 + $0x1], 0 }
   0x4   :  { %12 = vsyncpa [#allocation8], 0 }
   0x5   :  { %14 = vsyncpa [#allocation8 + $0x1], 0 }
   0x6   :  { %15 = vsyncpa [#allocation11], 0 }
   0x7   :  { %17 = vsyncpa [#allocation11 + $0x1], 0 }
   0x8   :  { %18 = vsyncpa [#allocation6], 0 }
   0x9   :  { %20 = vsyncpa [#allocation6 + $0x1], 0  ;;  %s991_s15 = smov 0   ;;  %s993_s16 = smov 0  }
   0xa   :  { %s995_s17 = smov 0   ;;  %s997_s18 = smov 0  }
   0xb   :  { %s999_s19 = smov 0   ;;  %s1001_s20 = smov 0  }
   0xc   :  { %s1003_s21 = smov 0   ;;  %s1005_s22 = smov 0  }
   0xd   :  { %s1007_s23 = smov 0   ;;  %s1009_s24 = smov 0  }
   0xe   :  { %s1011_s25 = smov 0  }
   0xf LB: > { %1357 = sst [smem:[#allocation17_spill]] %s918_s15  ;;  %s1045_s26 = sadd.s32 4294967295, %s958_s25   ;;  %s958_s25 = sphi %s1011_s25, %s26_s25   ;;  %s954_s24 = sphi %s1009_s24, %s1394_s24   ;;  %s950_s23 = sphi %s1007_s23, %s1393_s23   ;;  %s946_s22 = sphi %s1005_s22, %s1392_s22   ;;  %s942_s21 = sphi %s1003_s21, %s1391_s21   ;;  %s938_s20 = sphi %s1001_s20, %s1390_s20   ;;  %s934_s19 = sphi %s999_s19, %s1398_s19   ;;  %s930_s18 = sphi %s997_s18, %s1397_s18   ;;  %s926_s17 = sphi %s995_s17, %s1388_s17   ;;  %s922_s16 = sphi %s993_s16, %s1396_s16   ;;  %s918_s15 = sphi %s991_s15, %s1395_s15  }
  0x10   : > { %1358 = sst [smem:[#allocation18_spill]] %s926_s17  ;;  %s559_s27 = sadd.s32 4294967294, %s958_s25  }
  0x11   : > { %1359 = sst [smem:[#allocation19_spill]] %s938_s20  ;;  %s35_s28 = sadd.s32 1, %s950_s23 }
  0x12   : > { %1360 = sst [smem:[#allocation20_spill]] %s950_s23  ;;  %s38_s29 = sadd.s32 1, %s954_s24 }
  0x13   : > { %1361 = sst [smem:[#allocation21_spill]] %s954_s24  ;;  %p36_p0 = scmp.ge.s32.totalorder %s35_s28, 2 }
  0x14   : > { %1362 = sst [smem:[#allocation22_spill]] %s958_s25  ;;  %s47_s30 = sadd.s32 1, %s938_s20 }
  0x15   : > { %p54_p1 = scmp.ne.s32.totalorder %s938_s20, %s934_s19  ;;  %p55_p2 = scmp.eq.s32.totalorder %s958_s25, 0 }
  0x16   : > { %s1400_s28 = smov (%p36_p0, %s35_s28), 0  ;;  %s1402_s29 = smov (!%p36_p0, %s38_s29), %s954_s24 }
  0x17   : > { %1363 = sst [smem:[#allocation23_spill]] %s1400_s28  ;;  %s43_s5 = ssub.s32 %s950_s23, %s1400_s28 }
  0x18   : > { %p1059_p3 = por %p55_p2, %p54_p1  ;;  %p40_p4 = scmp.ge.s32.totalorder %s1402_s29, 2 }
  0x19   : > { %p60_p5 = scmp.ne.s32.totalorder %s934_s19, %s930_s18  ;;  %p61_p6 = scmp.eq.s32.totalorder %s1045_s26, 0 }
  0x1a   : > { %s157_s7 = sadd.s32 1, %s926_s17  ;;  %s1404_s29 = smov (%p40_p4, %s1402_s29), 0 }
  0x1b   : > { %1365 = sst [smem:[#allocation24_spill]] %s1404_s29  ;;  %p1068_p7 = por %p61_p6, %p60_p5 }
  0x1c   : > { %p167_p8 = scmp.ne.s32.totalorder %s926_s17, %s922_s16  ;;  %s42_s9 = ssub.s32 %s954_s24, %s1404_s29 }
  0x1d   : > { %s1366_s8 = scalar_select %p1068_p7, 1, 0 }
  0x1e   : > { %p168_p9 = scmp.eq.s32.totalorder %s1045_s26, 3  ;;  %s44_s10 = sor.u32 %s43_s5, %s42_s9 }
  0x1f   : > { %p155_p10 = scmp.eq.s32.totalorder %s42_s9, 0  ;;  %p45_p11 = scmp.eq.s32.totalorder %s44_s10, 0 }
  0x20   : > { %p1077_p12 = por %p168_p9, %p167_p8  ;;  %p173_p13 = scmp.ne.s32.totalorder %s922_s16, %s918_s15 }
  0x21   : > { %s1082_s12 = scalar_select %p155_p10, %s926_s17, %s157_s7  }
  0x22   : > { %s1367_s11 = scalar_select %p1077_p12, 1, 0 }
  0x23   : > { %1368 = sst [smem:[#allocation25_spill]] %s1082_s12  ;;  %p174_p0 = scmp.eq.s32.totalorder %s559_s27, 3 }
  0x24   : > { %s1085_s13 = scalar_select %p45_p11, %s938_s20, %s47_s30  }
  0x25   : > { %p613_p1 = scmp.lt.s32.totalorder %s958_s25, 4  ;;  %p1090_p2 = por %p174_p0, %p173_p13 }
  0x26   : > { %1369 = sst [smem:[#allocation26_spill]] %s1085_s13  ;;  %s1095_s18 = sand.u32 1, %s938_s20  }
  0x27   : > { %s1370_s14 = scalar_select %p1090_p2, 1, 0 }
  0x28   : > { %s1098_s5 = sshll.u32 %s1095_s18, 3  ;;  %s563_s9 = sshll.u32 %s954_s24, 1 }
  0x29   : > { %1371 = sst [smem:[#allocation27_spill]] %s1370_s14  ;;  %s203_s7 = sadd.s32 %s950_s23, %s563_s9 }
  0x2a   : > { %p1104_p4 = pnand %p613_p1, %p1059_p3  ;;  %s1108_s27 = sshll.u32 %s203_s7, 7 }
  0x2b   : > { %s214_s10 = sand.u32 1, %s958_s25   ;;  %s1373_s1 = sld [smem:[#allocation28_spill]] }
  0x2c   : > { %s1372_s30 = scalar_select %p1104_p4, 1, 0 }
  0x2d   : > { %s218_s9 = scalar_lea.vmem [#allocation7], %s1098_s5  ;;  %s1122_s24 = scalar_lea.sflag [#allocation8], %s214_s10 }
  0x2e   : > { %s227_s6 = sshll.u32 %s218_s9, 4  ;;  %p1128_p8 = pneg %p1104_p4  ;;  %s1119_s6 = int_to_ptr.vmem [resolvable:$true] %s227_s6 }
  0x31   : > { %s1115_s13 = scalar_lea.hbm %s1373_s1, %s1108_s27  ;;  %s713_s9 = scalar_lea.hbm %s1373_s1, 512 }
  0x32   : > { %s708_s7 = scalar_lea.hbm %s1115_s13, 128  ;;  %p714_p11 = scmp.lt.u32.totalorder %s1115_s13, %s1373_s1 }
  0x33   : > { %p709_p6 = scmp.ne.s32.totalorder %s1115_s13, %s708_s7  ;;  %p715_p13 = scmp.lt.u32.totalorder %s713_s9, %s708_s7 }
  0x34   : > { %p717_p1 = scmp.lt.u32.totalorder %s708_s7, %s1115_s13 }
  0x35   : > { %p711_p9 = pnand %p1128_p8, %p709_p6  ;;  %p716_p0 = por %p715_p13, %p714_p11 }
  0x37   : > { %p712_p10 = pneg %p711_p9  ;;  %p718_p3 = por %p717_p1, %p716_p0 }
  0x39   : > { %p719_p5 = pnand %p718_p3, %p712_p10 }
  0x3b   : > { %722 = shalt.err (!%p719_p5)
}
  0x3c   : > { %s723_s10 = scalar_lea.vmem %s1119_s6, 128  ;;  %s960_s28 = smov [#allocation7]  }
  0x3d   : > { %p724_p6 = scmp.ne.s32.totalorder %s1119_s6, %s723_s10  ;;  %s728_s29 = sshll.u32 %s960_s28, 4  ;;  %s729_s29 = int_to_ptr.vmem [resolvable:$false] %s728_s29 }
  0x3e   : > { %s730_s20 = scalar_lea.vmem %s729_s29, 256  ;;  %p731_p12 = scmp.lt.s32.totalorder %s1119_s6, %s729_s29 }
  0x3f   : > { %p726_p9 = pnand %p724_p6, %p1128_p8  ;;  %p732_p7 = scmp.lt.s32.totalorder %s730_s20, %s723_s10 }
  0x41   : > { %p727_p2 = pneg %p726_p9  ;;  %p733_p11 = por %p732_p7, %p731_p12 }
  0x43   : > { %p734_p13 = pnand %p733_p11, %p727_p2 }
  0x45   : > { %737 = shalt.err (!%p734_p13)
}
  0x46   : > { %602 = dma.hbm_to_vmem [thread:$0]  (!%p1104_p4), %s1115_s13, 128, %s1119_s6, %s1122_s24  }
  0x47   : > { %p1375_p3 = scmp.lt.s32.totalorder %s958_s25, 5  ;;  %p1376_p5 = scmp.ge.s32.totalorder %s958_s25, 1 }
  0x48   : > { %s1164_s10 = scalar_lea.hbm %s1337_s0, %s1108_s27  ;;  %s198_s28 = scalar_lea.vmem [#allocation4], %s1098_s5 }
  0x49   : > { %p1156_p10 = pnand %p1376_p5, %p1375_p3  ;;  %s207_s29 = sshll.u32 %s198_s28, 4  ;;  %s1167_s29 = int_to_ptr.vmem [resolvable:$true] %s207_s29 }
  0x4a   : > { %s1173_s20 = scalar_lea.hbm %s1339_s2, %s1108_s27  ;;  %s195_s1 = scalar_lea.sflag [#allocation5], %s1095_s18 }
  0x4b   : > { %s1377_s12 = scalar_select %p1156_p10, 1, 0 }
  0x4c   : > { %s738_s17 = scalar_lea.hbm %s1164_s10, 128  ;;  %s743_s14 = scalar_lea.hbm %s1337_s0, 512 }
  0x4d   : > { %p739_p7 = scmp.ne.s32.totalorder %s1164_s10, %s738_s17  ;;  %p744_p0 = scmp.lt.u32.totalorder %s1164_s10, %s1337_s0 }
  0x4e   : > { %p745_p1 = scmp.lt.u32.totalorder %s743_s14, %s738_s17  ;;  %p747_p9 = scmp.lt.u32.totalorder %s738_s17, %s1164_s10 }
  0x4f   : > { %p741_p12 = pnand %p739_p7, %p1128_p8 }
  0x50   : > { %p746_p6 = por %p745_p1, %p744_p0 }
  0x51   : > { %p742_p2 = pneg %p741_p12 }
  0x52   : > { %p748_p11 = por %p747_p9, %p746_p6 }
  0x54   : > { %p749_p13 = pnand %p748_p11, %p742_p2 }
  0x56   : > { %752 = shalt.err (!%p749_p13)
}
  0x57   : > { %s753_s28 = scalar_lea.vmem %s1167_s29, 128  ;;  %s961_s13 = smov [#allocation4]  }
  0x58   : > { %p754_p3 = scmp.ne.s32.totalorder %s1167_s29, %s753_s28  ;;  %s758_s6 = sshll.u32 %s961_s13, 4  ;;  %s759_s6 = int_to_ptr.vmem [resolvable:$false] %s758_s6 }
  0x59   : > { %s760_s15 = scalar_lea.vmem %s759_s6, 256  ;;  %p761_p12 = scmp.lt.s32.totalorder %s1167_s29, %s759_s6 }
  0x5a   : > { %p756_p5 = pnand %p754_p3, %p1128_p8  ;;  %p762_p10 = scmp.lt.s32.totalorder %s760_s15, %s753_s28 }
  0x5c   : > { %p757_p7 = pneg %p756_p5  ;;  %p763_p0 = por %p762_p10, %p761_p12 }
  0x5e   : > { %p764_p1 = pnand %p763_p0, %p757_p7 }
  0x60   : > { %767 = shalt.err (!%p764_p1)
}
  0x61   : > { %599 = dma.hbm_to_vmem [thread:$0]  (!%p1104_p4), %s1164_s10, 128, %s1167_s29, %s195_s1  }
  0x62   : > { %s238_s17 = scalar_lea.vmem [#allocation9], %s1098_s5  ;;  %s768_s14 = scalar_lea.hbm %s1173_s20, 128 }
  0x63   : > { %s247_s25 = sshll.u32 %s238_s17, 4  ;;  %p769_p2 = scmp.ne.s32.totalorder %s1173_s20, %s768_s14  ;;  %s248_s25 = int_to_ptr.vmem [resolvable:$true] %s247_s25 }
  0x64   : > { %s773_s28 = scalar_lea.hbm %s1339_s2, 512  ;;  %p774_p9 = scmp.lt.u32.totalorder %s1173_s20, %s1339_s2 }
  0x65   : > { %p771_p10 = pnand %p769_p2, %p1128_p8  ;;  %p775_p11 = scmp.lt.u32.totalorder %s773_s28, %s768_s14 }
  0x66   : > { %p777_p3 = scmp.lt.u32.totalorder %s768_s14, %s1173_s20 }
  0x67   : > { %p772_p6 = pneg %p771_p10  ;;  %p776_p13 = por %p775_p11, %p774_p9 }
  0x69   : > { %p778_p5 = por %p777_p3, %p776_p13 }
  0x6b   : > { %p779_p7 = pnand %p778_p5, %p772_p6 }
  0x6d   : > { %782 = shalt.err (!%p779_p7)
}
  0x6e   : > { %s783_s1 = scalar_lea.vmem %s248_s25, 128  ;;  %s962_s10 = smov [#allocation9]  }
  0x6f   : > { %p784_p12 = scmp.ne.s32.totalorder %s248_s25, %s783_s1  ;;  %s788_s29 = sshll.u32 %s962_s10, 4  ;;  %s789_s29 = int_to_ptr.vmem [resolvable:$false] %s788_s29 }
  0x70   : > { %s790_s15 = scalar_lea.vmem %s789_s29, 256  ;;  %p791_p2 = scmp.lt.s32.totalorder %s248_s25, %s789_s29 }
  0x71   : > { %p786_p0 = pnand %p784_p12, %p1128_p8  ;;  %p792_p10 = scmp.lt.s32.totalorder %s790_s15, %s783_s1 }
  0x73   : > { %p787_p1 = pneg %p786_p0  ;;  %p793_p4 = por %p792_p10, %p791_p2 }
  0x75   : > { %p794_p9 = pnand %p793_p4, %p787_p1 }
  0x77   : > { %797 = shalt.err (!%p794_p9)
}
  0x78   : > { %p1378_p11 = scmp.ne.s32.totalorder %s1372_s30, 0  ;;  %s1220_s7 = scalar_lea.hbm %s1340_s3, %s1108_s27 }
  0x79   : > { %s258_s9 = scalar_lea.vmem [#allocation10], %s1098_s5  ;;  %s255_s13 = scalar_lea.sflag [#allocation11], %s1095_s18 }
  0x7a   : > { %605 = dma.hbm_to_vmem [thread:$0]  (!%p1378_p11), %s1173_s20, 128, %s248_s25, %s1122_s24  }
  0x7b   : > { %s267_s28 = sshll.u32 %s258_s9, 4  ;;  %s798_s6 = scalar_lea.hbm %s1220_s7, 128  ;;  %s268_s28 = int_to_ptr.vmem [resolvable:$true] %s267_s28 }
  0x7c   : > { %p799_p4 = scmp.ne.s32.totalorder %s1220_s7, %s798_s6  ;;  %s803_s20 = scalar_lea.hbm %s1340_s3, 512 }
  0x7d   : > { %p804_p3 = scmp.lt.u32.totalorder %s1220_s7, %s1340_s3  ;;  %p805_p5 = scmp.lt.u32.totalorder %s803_s20, %s798_s6 }
  0x7e   : > { %p801_p6 = pnand %p799_p4, %p1128_p8  ;;  %p807_p12 = scmp.lt.u32.totalorder %s798_s6, %s1220_s7 }
  0x7f   : > { %p806_p7 = por %p805_p5, %p804_p3 }
  0x80   : > { %p802_p13 = pneg %p801_p6 }
  0x81   : > { %p808_p0 = por %p807_p12, %p806_p7 }
  0x83   : > { %p809_p1 = pnand %p808_p0, %p802_p13 }
  0x85   : > { %812 = shalt.err (!%p809_p1)
}
  0x86   : > { %s813_s18 = scalar_lea.vmem %s268_s28, 128  ;;  %s963_s5 = smov [#allocation10]  }
  0x87   : > { %p814_p2 = scmp.ne.s32.totalorder %s268_s28, %s813_s18  ;;  %s818_s10 = sshll.u32 %s963_s5, 4  ;;  %s819_s10 = int_to_ptr.vmem [resolvable:$false] %s818_s10 }
  0x88   : > { %s820_s29 = scalar_lea.vmem %s819_s10, 256  ;;  %p821_p4 = scmp.lt.s32.totalorder %s268_s28, %s819_s10 }
  0x89   : > { %p816_p10 = pnand %p814_p2, %p1128_p8  ;;  %p822_p6 = scmp.lt.s32.totalorder %s820_s29, %s813_s18 }
  0x8b   : > { %p817_p9 = pneg %p816_p10  ;;  %p823_p11 = por %p822_p6, %p821_p4 }
  0x8d   : > { %p824_p3 = pnand %p823_p11, %p817_p9 }
  0x8f   : > { %827 = shalt.err (!%p824_p3)
}
  0x90   : > { %p1379_p5 = scmp.ne.s32.totalorder %s1372_s30, 0  ;;  %p1380_p13 = scmp.ne.s32.totalorder %s1377_s12, 0 }
  0x91   : > { %s278_s23 = sand.u32 (!%p1380_p13), 1, %s934_s19   ;;  %p1381_p8 = scmp.ne.s32.totalorder (!%p1380_p13), %s1366_s8, 0 }
  0x92   : > { %608 = dma.hbm_to_vmem [thread:$0]  (!%p1379_p5), %s1220_s7, 128, %s268_s28, %s255_s13  }
  0x93   : > { %276 = sbr.rel (%p1380_p13) target bundleno = 378 (0x17a), region = 36  ;;  %s1244_s15 = sshll.u32 (!%p1380_p13), %s278_s23, 3 }
  0x94   : > { %s279_s17 = scalar_lea.sflag (!%p1380_p13), [#allocation5], %s278_s23  ;;  %s282_s14 = scalar_lea.vmem (!%p1380_p13), [#allocation4], %s1244_s15 }
  0x9a   : > { %901 = dma.done.wait (%p1381_p8), %s279_s17, 128  }
  0x9b   : > { %903 = vsyncadd (%p1381_p8), %s279_s17, 4294967168  ;;  %s287_s30 = sand.u32 1, %s1045_s26   ;;  %s291_s12 = scalar_lea.vmem [#allocation7], %s1244_s15 }
  0x9c   : > { %s288_s7 = scalar_lea.sflag [#allocation8], %s287_s30 }
  0x9d   : > { %905 = dma.done.wait (%p1381_p8), %s288_s7, 256  }
  0x9e   : > { %907 = vsyncadd (%p1381_p8), %s288_s7, 4294967040  ;;  %s300_s9 = scalar_lea.vmem [#allocation9], %s1244_s15  ;;  %s306_s28 = scalar_lea.sflag [#allocation11], %s278_s23 }
  0x9f   : > { %s309_s13 = scalar_lea.vmem [#allocation10], %s1244_s15 }
  0xa0   : > { %909 = dma.done.wait (%p1381_p8), %s306_s28, 128  }
  0xa1   : > { %911 = vsyncadd (%p1381_p8), %s306_s28, 4294967168  ;;  %s346_s26 = sand.u32 1, %s922_s16   ;;  %p580_p11 = scmp.ne.s32.totalorder %s942_s21, 0 }
  0xa2   : > { %s1266_s6 = sshll.u32 %s346_s26, 3  ;;  %v964_v0 = vmov (!%p580_p11), 0.0  }
  0xa3   : > { %s348_s1 = scalar_lea.vmem [#allocation12], %s1266_s6  ;;  %352 = sbr.rel (%p580_p11) target bundleno = 170 (0xaa), region = 56  ;;  %353 = vst [vmem:[#allocation2] sm:$0xff] (!%p580_p11), %v964_v0  ;;  %354 = vst [vmem:[#allocation3] sm:$0xff] (!%p580_p11), %v964_v0 }
  0xaa PF: > { %v355_v1 = vld [vmem:[%s282_s14] sm:$0xff]  ;;  %v356_v2 = vld [vmem:[%s291_s12] sm:$0xff]  ;;  %p581_p7 = scmp.ne.s32.totalorder %s942_s21, 1 }
  0xab   : > { %v358_v3 = vsub.f32 %v355_v1, %v356_v2  ;;  %v367_v4 = vld [vmem:[%s309_s13] sm:$0xff]  ;;  %v357_v9 = vld [vmem:[%s300_s9] sm:$0xff]  ;;  %vm387_vm0 = vcmask (!%p581_p7), 7168  }
  0xac   : > { %v372_v5 = vld [vmem:[#allocation3] sm:$0xff]  ;;  %v369_v16 = vld [vmem:[#allocation2] sm:$0xff] }
  0xad   : > { %v373_v6 = vadd.f32 %v372_v5, %v367_v4  ;;  %v359_v7 = vmul.f32 1.442695, %v358_v3 }
  0xaf   : > { %374 = vst [vmem:[#allocation3] sm:$0xff] %v373_v6  ;;  %704 = vpow2.f32 %v359_v7 }
  0xb6   : > { %v382_v19 = vld [vmem:[#allocation3] sm:$0xff] (!%p581_p7) }
  0xb7   : > { %383 = vadd.xlane.f32.xlu0 (!%p581_p7), %v382_v19 }
  0xb9   : > { %v705_v8 = vpop.eup %704 }
  0xba   : > { %v362_v10 = vmax.f32 %v705_v8, 0.8  ;;  %v361_v11 = vmul.f32 %v705_v8, %v357_v9 }
  0xbc   : > { %v363_v12 = vmin.f32 %v362_v10, 1.2 }
  0xbe   : > { %v364_v13 = vmul.f32 %v363_v12, %v357_v9 }
  0xc0   : > { %v365_v14 = vmin.f32 %v361_v11, %v364_v13 }
  0xc2   : > { %v366_v15 = vsub.f32 0.0, %v365_v14  ;;  %378 = sbr.rel (%p581_p7) target bundleno = 353 (0x161), region = 60 }
  0xc4   : > { %v368_v17 = vmul.f32 %v367_v4, %v366_v15 }
  0xc6   : > { %v370_v18 = vadd.f32 %v369_v16, %v368_v17 }
  0xc8   : > { %371 = vst [vmem:[#allocation2] sm:$0xff] %v370_v18 }
  0xcf   : > { %v379_v20 = vld [vmem:[#allocation2] sm:$0xff] }
  0xd0   : > { %380 = vadd.xlane.f32.xlu0 %v379_v20 }
 0x144   : > { %v384_v21 = vpop.xlane.xlu0 %383 }
 0x145   : > { %706 = vrcp.f32 %v384_v21 }
 0x14f   : > { %v707_v23 = vpop.eup %706 }
 0x15d   : > { %v381_v22 = vpop.xlane.xlu0 %380 }
 0x15e   : > { %v386_v24 = vmul.f32 %v707_v23, %v381_v22 }
 0x160   : > { %388 = vst.msk [vmem:[%s348_s1] sm:$0xff] %vm387_vm0, %v386_v24 }
 0x161 PF: > { %s583_s21 = sshll.u32 %s946_s22, 7  ;;  %s403_s25 = sshll.u32 %s348_s1, 4  ;;  %s404_s25 = int_to_ptr.vmem [resolvable:$true] %s403_s25 }
 0x162   : > { %s1277_s20 = scalar_lea.hbm %s1341_s4, %s583_s21  ;;  %s390_s27 = scalar_lea.sflag [#allocation6], %s346_s26 }
 0x163   : > { %s828_s18 = scalar_lea.vmem %s404_s25, 128  ;;  %p1382_p0 = scmp.ne.s32.totalorder %s1367_s11, 0 }
 0x164   : > { %p829_p12 = scmp.ne.s32.totalorder %s404_s25, %s828_s18  ;;  %s965_s5 = smov [#allocation12]  }
 0x165   : > { %s832_s10 = sshll.u32 %s965_s5, 4  ;;  %s833_s10 = int_to_ptr.vmem [resolvable:$false] %s832_s10 }
 0x166   : > { %p830_p1 = pnand %p829_p12, %p1382_p0  ;;  %s834_s29 = scalar_lea.vmem %s833_s10, 256 }
 0x167   : > { %p835_p10 = scmp.lt.s32.totalorder %s404_s25, %s833_s10  ;;  %p836_p9 = scmp.lt.s32.totalorder %s834_s29, %s828_s18 }
 0x168   : > { %p831_p2 = pneg %p830_p1 }
 0x169   : > { %p837_p4 = por %p836_p9, %p835_p10 }
 0x16b   : > { %p838_p6 = pnand %p837_p4, %p831_p2 }
 0x16d   : > { %841 = shalt.err (!%p838_p6)
}
 0x16e   : > { %s842_s22 = scalar_lea.hbm %s1277_s20, 128  ;;  %s846_s17 = scalar_lea.hbm %s1341_s4, 256 }
 0x16f   : > { %p843_p3 = scmp.ne.s32.totalorder %s1277_s20, %s842_s22  ;;  %p847_p8 = scmp.lt.u32.totalorder %s1277_s20, %s1341_s4 }
 0x170   : > { %p848_p11 = scmp.lt.u32.totalorder %s846_s17, %s842_s22  ;;  %p850_p12 = scmp.lt.u32.totalorder %s842_s22, %s1277_s20 }
 0x171   : > { %p844_p5 = pnand %p843_p3, %p1382_p0 }
 0x172   : > { %p849_p7 = por %p848_p11, %p847_p8 }
 0x173   : > { %p845_p13 = pneg %p844_p5 }
 0x174   : > { %p851_p1 = por %p850_p12, %p849_p7 }
 0x176   : > { %p852_p2 = pnand %p851_p1, %p845_p13 }
 0x178   : > { %855 = shalt.err (!%p852_p2)
}
 0x179   : > { %594 = dma.vmem_to_hbm [thread:$0]  (%p1382_p0), %s404_s25, 128, %s1277_s20, %s390_s27  }
 0x17a PF: > { %s1383_s7 = sld [smem:[#allocation22_spill]]  ;;  %s1384_s12 = sld [smem:[#allocation17_spill]] }
 0x17b   : > { %s1385_s9 = sld [smem:[#allocation27_spill]] }
 0x180   : > { %p614_p10 = scmp.ge.s32.totalorder %s1383_s7, 2  ;;  %s415_s28 = sand.u32 1, %s1384_s12  }
 0x181   : > { %p1386_p9 = scmp.ne.s32.totalorder %s1385_s9, 0  ;;  %s416_s13 = scalar_lea.sflag [#allocation6], %s415_s28 }
 0x183   : > { %p610_p4 = pnand %p614_p10, %p1386_p9 }
 0x185   : > { %913 = dma.done.wait (!%p610_p4), %s416_s13, 128  }
 0x186   : > { %915 = vsyncadd (!%p610_p4), %s416_s13, 4294967168  ;;  %s26_s25 = sadd.s32 1, %s1383_s7   ;;  %s1387_s26 = sld [smem:[#allocation18_spill]] }
 0x187   : > { %p23_p6 = scmp.ge.s32.totalorder %s26_s25, 6   ;;  %s1388_s17 = sld [smem:[#allocation25_spill]] }
 0x188   : > { %s1389_s11 = sld [smem:[#allocation19_spill]]  ;;  %s1390_s20 = sld [smem:[#allocation26_spill]] }
 0x189   : > { %s1391_s21 = sld [smem:[#allocation20_spill]]  ;;  %s1392_s22 = sld [smem:[#allocation21_spill]] }
 0x18a   : > { %s1393_s23 = sld [smem:[#allocation23_spill]]  ;;  %s1394_s24 = sld [smem:[#allocation24_spill]] }
 0x18b   : > { %s1395_s15 = smov %s922_s16  ;;  %s1397_s18 = smov %s934_s19 }
 0x18c   : > { %s1396_s16 = smov %s1387_s26  ;;  %25 = sbr.rel (!%p23_p6) target bundleno = 15 (0xf), region = 126 }
 0x18e   : > { %s1398_s19 = smov %s1389_s11 }
 0x193   :  { %421 = vsyncpa [#allocation5], 1 }
 0x194   :  { %423 = vsyncpa [#allocation5 + $0x1], 1 }
 0x195   :  { %424 = vsyncpa [#allocation8], 1 }
 0x196   :  { %426 = vsyncpa [#allocation8 + $0x1], 1 }
 0x197   :  { %427 = vsyncpa [#allocation11], 1 }
 0x198   :  { %429 = vsyncpa [#allocation11 + $0x1], 1 }
 0x199   :  { %430 = vsyncpa [#allocation6], 1 }
 0x19a   :  { %432 = vsyncpa [#allocation6 + $0x1], 1 }

</bundles_post_ra>
